<compile_context>
chip_gen: v7x
topology: tpu7x:2x2x1
jax: 0.10.0
libtpu: 0.0.40
codegen_flags: <defaults>
</compile_context>

<pallas_src>
import math
from functools import partial
from typing import NamedTuple

import numpy as np

import jax
import jax.numpy as jnp
from jax import lax
from jax.experimental import pallas as pl
from jax.experimental.pallas import tpu as pltpu

LANES = 128                    # vreg lane width; every slab row / activation is this wide
WROWS = 128                    # rows per zero-padded weight block (full MXU contraction)
N_LAYERS = 4
B_OFF = N_LAYERS * WROWS       # 512: bias block (rows 0..3 used, one 8-row tile)
C_OFF = B_OFF + 8              # 520: prior-constant block (mu, inv_two_var, const_term)
SLAB_ROWS = C_OFF + 8          # 528
BATCH_TILE = 256               # M tile: one MXU pass on v6e/v7x (128 is ideal on v5e)


def _round_up(n: int, m: int) -> int:
    return ((n + m - 1) // m) * m


# --------------------------------------------------------------------------- kernel ----
def _linear_net_kernel(x_ref, slab_ref, out_ref):
    """Fused 4-layer MLP forward + Normal-prior negative log-prob.

    x_ref:    (BT, 128)  input batch tile, features zero-padded to 128 lanes.
    slab_ref: (528, 128) packed parameters (layout documented in pack_params).
    out_ref:  (BT, 128)  predictions in lanes [:out_features]; on grid step 0,
              row 0 / lane 127 additionally carries the scalar -prior_loss.
    """
    bias = slab_ref[B_OFF:B_OFF + 8, :]                       # (8, 128); rows 0..3 used

    # ---- 4 uniform full-width MXU layers (zero padding keeps extra lanes exactly 0) ----
    h = x_ref[...]                                            # (BT, 128) f32
    for li in range(N_LAYERS):
        w = slab_ref[li * WROWS:(li + 1) * WROWS, :]          # (128, 128) zero-padded
        h = jnp.dot(h, w, preferred_element_type=jnp.float32) + bias[li:li + 1, :]
        if li < N_LAYERS - 1:
            h = jnp.tanh(h)                                   # EUP
    out_ref[...] = h.astype(out_ref.dtype)                    # full-width unmasked store

    # ---- prior loss: one algebraic VPU reduction over the zero-padded parameter area.
    # Runs only on the first grid step; the scalar lands in that step's output block. ----
    @pl.when(pl.program_id(0) == 0)
    def _():
        cblk = slab_ref[C_OFF:C_OFF + 8, :]                   # prior constants, per-lane
        mu_row = cblk[0:1, :]
        itv_row = cblk[1:2, :]                                # 1 / (2 sigma^2)
        ct_row = cblk[2:3, :]                                 # padding + log-norm constant
        d = slab_ref[0:C_OFF, :] - mu_row                     # (520, 128)
        ssq = jnp.sum(d * d)                                  # single cross-lane reduction
        neg_prior_row = itv_row * ssq - ct_row                # (1, 128), identical lanes
        blk = out_ref[0:8, :]
        row = lax.broadcasted_iota(jnp.int32, (8, LANES), 0)
        lane = lax.broadcasted_iota(jnp.int32, (8, LANES), 1)
        out_ref[0:8, :] = jnp.where(
            (row == 0) & (lane == LANES - 1),
            jnp.broadcast_to(neg_prior_row, (8, LANES)), blk)


# --------------------------------------------------------------------- packing (once) ----
class PackedLinearNet(NamedTuple):
    slab: jax.Array            # (528, 128) f32 parameter + constant slab
    out_features: int
    n_params: int


def pack_params(params, prior_mu: float = 0.0, prior_sigma: float = 1.0) -> PackedLinearNet:
    """Pack (w1, b1, ..., w4, b4) + prior constants into one (528, 128) f32 slab.

    Called ONCE per parameter update, NOT per forward call.  Weights are stored
    transposed vs. PyTorch, shape (in_features, out_features), so the kernel computes
    y = x @ W + b.  Row layout:
        [  0:128) w1   [128:256) w2   [256:384) w3   [384:512) w4      (zero padded)
        [512:520) biases: row i = layer-i bias, full 128 lanes, zero padded
        [520:528) prior constants: row0 = mu, row1 = 1/(2 sigma^2), row2 = const_term
    Zero padding keeps the full-width matmuls exact; its contribution to the prior's
    sum-of-squares is folded into const_term here on the host.
    """
    assert len(params) == 8, "expected exactly 4 Linear layers: (w1, b1, ..., w4, b4)"
    ws, bs = params[0::2], params[1::2]
    dims = [int(ws[0].shape[0])] + [int(w.shape[1]) for w in ws]
    out_f = dims[-1]
    assert dims[0] <= LANES, f"in_features={dims[0]} must be <= {LANES}"
    assert out_f <= LANES - 1, (
        f"out_features={out_f} must be <= {LANES - 1} (lane 127 carries the prior scalar)")
    for i, (w, b) in enumerate(zip(ws, bs)):
        assert tuple(w.shape) == (dims[i], dims[i + 1]), f"layer {i} weight shape mismatch"
        assert int(np.prod(b.shape)) == dims[i + 1], f"layer {i} bias shape mismatch"
        assert dims[i] <= WROWS and dims[i + 1] <= LANES, (
            f"layer {i} width ({dims[i]}->{dims[i + 1]}) exceeds the 128-wide packing")

    slab = np.zeros((SLAB_ROWS, LANES), np.float32)
    for li, (w, b) in enumerate(zip(ws, bs)):
        w = np.asarray(w, np.float32)
        b = np.asarray(b, np.float32).reshape(-1)
        slab[li * WROWS:li * WROWS + w.shape[0], :w.shape[1]] = w
        slab[B_OFF + li, :b.shape[0]] = b

    n_params = sum(int(np.prod(p.shape)) for p in params)
    n_pad = C_OFF * LANES - n_params
    mu = float(np.float32(prior_mu))           # match the f32 value stored in the slab
    sigma = float(prior_sigma)
    inv_two_var = 0.5 / (sigma * sigma)
    const_term = (inv_two_var * n_pad * mu * mu
                  - n_params * (math.log(sigma) + 0.5 * math.log(2.0 * math.pi)))
    slab[C_OFF + 0, :] = mu
    slab[C_OFF + 1, :] = inv_two_var
    slab[C_OFF + 2, :] = const_term
    return PackedLinearNet(jnp.asarray(slab), out_f, n_params)


# ------------------------------------------------------------------------- forward ----
@partial(jax.jit, static_argnames=("out_features", "training"))
def _forward_impl(x, slab, *, out_features: int, training: bool):
    assert x.ndim == 2 and x.shape[1] <= LANES
    batch = x.shape[0]
    bt = min(BATCH_TILE, _round_up(batch, 8))         # batch tile (multiple of 8)
    batch_p = _round_up(batch, bt)
    # Single host-side data op per call: pad rows to the tile and features to 128 lanes.
    x_pad = jnp.pad(x.astype(jnp.float32),
                    ((0, batch_p - batch), (0, LANES - x.shape[1])))

    out = pl.pallas_call(
        _linear_net_kernel,
        out_shape=jax.ShapeDtypeStruct((batch_p, LANES), jnp.float32),
        grid=(batch_p // bt,),
        in_specs=[pl.BlockSpec((bt, LANES), lambda i: (i, 0)),
                  pl.BlockSpec((SLAB_ROWS, LANES), lambda i: (0, 0))],
        out_specs=pl.BlockSpec((bt, LANES), lambda i: (i, 0)),
        compiler_params=pltpu.CompilerParams(dimension_semantics=("parallel",)),
    )(x_pad, slab)

    y = out[:batch, :out_features]
    if training:
        return y, out[0, LANES - 1]                    # scalar -prior_loss (merged output)
    return y


def linear_net_forward(x, packed: PackedLinearNet, training: bool = True):
    """JAX/Pallas equivalent of LinearNet.forward; `packed` comes from pack_params()."""
    return _forward_impl(x, packed.slab,
                         out_features=packed.out_features, training=training)


# --------------------------------------------------------------------------- helpers ----
def init_params(key, in_features, hidden_features, out_features):
    """Deterministic init mimicking nn.Linear's U(-1/sqrt(fan_in), 1/sqrt(fan_in))."""
    dims = [in_features] + list(hidden_features) + [out_features]
    params = []
    for i in range(len(dims) - 1):
        fan_in, fan_out = dims[i], dims[i + 1]
        key, kw, kb = jax.random.split(key, 3)
        bound = 1.0 / math.sqrt(fan_in)
        w = jax.random.uniform(kw, (fan_in, fan_out), jnp.float32, -bound, bound)
        b = jax.random.uniform(kb, (1, fan_out), jnp.float32, -bound, bound)
        params += [w, b]
    return tuple(params)


def reference_forward(x, params, prior_mu, prior_sigma):
    """Pure-JAX reference for validation."""
    w1, b1, w2, b2, w3, b3, w4, b4 = params
    h = jnp.tanh(x @ w1 + b1)
    h = jnp.tanh(h @ w2 + b2)
    h = jnp.tanh(h @ w3 + b3)
    y = h @ w4 + b4

    def lp_sum(v):
        return jnp.sum(
            -((v - prior_mu) ** 2) / (2.0 * prior_sigma ** 2)
            - math.log(prior_sigma) - 0.5 * math.log(2.0 * math.pi))

    prior = sum(lp_sum(p) for p in params)
    return y, -prior


# ------------------------------------------------------------------------------ demo ----
if __name__ == "__main__":
    in_features = 4
    hidden_features = [32, 32, 32]
    out_features = 2
    batch = 8

    key = jax.random.PRNGKey(0)
    key, kx, kxb = jax.random.split(key, 3)
    x = jax.random.normal(kx, (batch, in_features), dtype=jnp.float32)
    params = init_params(key, in_features, hidden_features, out_features)

    # Pack ONCE per parameter update; reuse across many forward calls.
    packed = pack_params(params, prior_mu=0.0, prior_sigma=1.0)

    # --- default prior (mu=0, sigma=1), training path ---
    y, neg_prior = linear_net_forward(x, packed, training=True)
    jax.block_until_ready((y, neg_prior))
    y_ref, neg_prior_ref = reference_forward(x, params, 0.0, 1.0)
    assert jnp.allclose(y, y_ref, atol=1e-5, rtol=1e-5), "prediction mismatch"
    assert jnp.allclose(neg_prior, neg_prior_ref, atol=1e-2, rtol=1e-5), \
        "prior loss mismatch"

    # --- non-trivial prior (exercises the zero-pad correction); looser tolerance because
    #     the padded slab adds ~64k extra mu^2 terms to the f32 accumulation ---
    packed2 = pack_params(params, prior_mu=0.3, prior_sigma=1.5)
    y2, neg_prior2 = linear_net_forward(x, packed2, training=True)
    jax.block_until_ready((y2, neg_prior2))
    y2_ref, neg_prior2_ref = reference_forward(x, params, 0.3, 1.5)
    assert jnp.allclose(y2, y2_ref, atol=1e-5, rtol=1e-5), "prediction mismatch (mu!=0)"
    assert jnp.allclose(neg_prior2, neg_prior2_ref, atol=2.5e-1, rtol=1e-4), \
        "prior loss mismatch (mu!=0)"

    # --- inference path + non-multiple-of-8 batch (wrapper pads/slices) ---
    x_small = x[:5]
    y_eval = linear_net_forward(x_small, packed, training=False)
    jax.block_until_ready(y_eval)
    y_eval_ref, _ = reference_forward(x_small, params, 0.0, 1.0)
    assert jnp.allclose(y_eval, y_eval_ref, atol=1e-5, rtol=1e-5), \
        "eval prediction mismatch"

    # --- large batch: exercises the batch-tile grid (512 rows -> 2 x 256-row tiles) ---
    x_big = jax.random.normal(kxb, (512, in_features), dtype=jnp.float32)
    y_big, neg_prior_big = linear_net_forward(x_big, packed, training=True)
    jax.block_until_ready((y_big, neg_prior_big))
    y_big_ref, neg_prior_big_ref = reference_forward(x_big, params, 0.0, 1.0)
    assert jnp.allclose(y_big, y_big_ref, atol=1e-5, rtol=1e-5), \
        "large-batch prediction mismatch"
    assert jnp.allclose(neg_prior_big, neg_prior_big_ref, atol=1e-2, rtol=1e-5), \
        "large-batch prior loss mismatch"

    print("KERNEL_OK")
</pallas_src>

<mosaic_0001>
module attributes {stable_mosaic.version = 11 : i64} {
  func.func @_linear_net_kernel(%arg0: i32, %arg1: memref<8x128xf32, #tpu.memory_space<vmem>>, %arg2: memref<528x128xf32, #tpu.memory_space<vmem>>, %arg3: memref<8x128xf32, #tpu.memory_space<vmem>>) attributes {dimension_semantics = [#tpu.dimension_semantics<parallel>], iteration_bounds = array<i64: 1>, scalar_prefetch = 0 : i64, scratch_operands = 0 : i64, tpu.core_type = #tpu.core_type<tc>, window_params = [{transform_indices = @transform_0, window_bounds = array<i64: 8, 128>}, {pipeline_mode = #tpu.pipeline_mode<synchronous>, transform_indices = @transform_1, window_bounds = array<i64: 528, 128>}, {transform_indices = @transform_2, window_bounds = array<i64: 8, 128>}]} {
    %c512 = arith.constant 512 : index
    %c0 = arith.constant 0 : index
    %0 = vector.load %arg2[%c512, %c0] : memref<528x128xf32, #tpu.memory_space<vmem>>, vector<8x128xf32>
    %c0_0 = arith.constant 0 : index
    %c0_1 = arith.constant 0 : index
    %1 = vector.load %arg1[%c0_0, %c0_1] : memref<8x128xf32, #tpu.memory_space<vmem>>, vector<8x128xf32>
    %c0_2 = arith.constant 0 : index
    %c0_3 = arith.constant 0 : index
    %2 = vector.load %arg2[%c0_2, %c0_3] : memref<528x128xf32, #tpu.memory_space<vmem>>, vector<128x128xf32>
    %cst = arith.constant dense<0.000000e+00> : vector<8x128xf32>
    %3 = tpu.matmul %1, %2, %cst {dimension_numbers = #tpu.dot_dimension_numbers<[1], [0], [0], [1], [0, 0, 1, 1], [], []>} : vector<8x128xf32>, vector<128x128xf32>, vector<8x128xf32> -> vector<8x128xf32>
    %4 = vector.extract_strided_slice %0 {offsets = [0, 0], sizes = [1, 128], strides = [1, 1]} : vector<8x128xf32> to vector<1x128xf32>
    %5 = vector.broadcast %4 : vector<1x128xf32> to vector<8x128xf32>
    %6 = arith.addf %3, %5 : vector<8x128xf32>
    %7 = math.tanh %6 : vector<8x128xf32>
    %c128 = arith.constant 128 : index
    %c0_4 = arith.constant 0 : index
    %8 = vector.load %arg2[%c128, %c0_4] : memref<528x128xf32, #tpu.memory_space<vmem>>, vector<128x128xf32>
    %cst_5 = arith.constant dense<0.000000e+00> : vector<8x128xf32>
    %9 = tpu.matmul %7, %8, %cst_5 {dimension_numbers = #tpu.dot_dimension_numbers<[1], [0], [0], [1], [0, 0, 1, 1], [], []>} : vector<8x128xf32>, vector<128x128xf32>, vector<8x128xf32> -> vector<8x128xf32>
    %10 = vector.extract_strided_slice %0 {offsets = [1, 0], sizes = [1, 128], strides = [1, 1]} : vector<8x128xf32> to vector<1x128xf32>
    %11 = vector.broadcast %10 : vector<1x128xf32> to vector<8x128xf32>
    %12 = arith.addf %9, %11 : vector<8x128xf32>
    %13 = math.tanh %12 : vector<8x128xf32>
    %c256 = arith.constant 256 : index
    %c0_6 = arith.constant 0 : index
    %14 = vector.load %arg2[%c256, %c0_6] : memref<528x128xf32, #tpu.memory_space<vmem>>, vector<128x128xf32>
    %cst_7 = arith.constant dense<0.000000e+00> : vector<8x128xf32>
    %15 = tpu.matmul %13, %14, %cst_7 {dimension_numbers = #tpu.dot_dimension_numbers<[1], [0], [0], [1], [0, 0, 1, 1], [], []>} : vector<8x128xf32>, vector<128x128xf32>, vector<8x128xf32> -> vector<8x128xf32>
    %16 = vector.extract_strided_slice %0 {offsets = [2, 0], sizes = [1, 128], strides = [1, 1]} : vector<8x128xf32> to vector<1x128xf32>
    %17 = vector.broadcast %16 : vector<1x128xf32> to vector<8x128xf32>
    %18 = arith.addf %15, %17 : vector<8x128xf32>
    %19 = math.tanh %18 : vector<8x128xf32>
    %c384 = arith.constant 384 : index
    %c0_8 = arith.constant 0 : index
    %20 = vector.load %arg2[%c384, %c0_8] : memref<528x128xf32, #tpu.memory_space<vmem>>, vector<128x128xf32>
    %cst_9 = arith.constant dense<0.000000e+00> : vector<8x128xf32>
    %21 = tpu.matmul %19, %20, %cst_9 {dimension_numbers = #tpu.dot_dimension_numbers<[1], [0], [0], [1], [0, 0, 1, 1], [], []>} : vector<8x128xf32>, vector<128x128xf32>, vector<8x128xf32> -> vector<8x128xf32>
    %22 = vector.extract_strided_slice %0 {offsets = [3, 0], sizes = [1, 128], strides = [1, 1]} : vector<8x128xf32> to vector<1x128xf32>
    %23 = vector.broadcast %22 : vector<1x128xf32> to vector<8x128xf32>
    %24 = arith.addf %21, %23 : vector<8x128xf32>
    %c0_10 = arith.constant 0 : index
    %c0_11 = arith.constant 0 : index
    %25 = vector.load %arg3[%c0_10, %c0_11] : memref<8x128xf32, #tpu.memory_space<vmem>>, vector<8x128xf32>
    tpu.vector_store %arg3[%c0_10, %c0_11], %24 {strides = array<i32>} : memref<8x128xf32, #tpu.memory_space<vmem>>, vector<8x128xf32>,
    %c0_i32 = arith.constant 0 : i32
    %26 = arith.cmpi eq, %arg0, %c0_i32 : i32
    %27 = arith.extui %26 : i1 to i32
    %c0_i32_12 = arith.constant 0 : i32
    %28 = arith.cmpi ne, %27, %c0_i32_12 : i32
    scf.if %28 {
      %c520 = arith.constant 520 : index
      %c0_13 = arith.constant 0 : index
      %29 = vector.load %arg2[%c520, %c0_13] : memref<528x128xf32, #tpu.memory_space<vmem>>, vector<8x128xf32>
      %30 = vector.extract_strided_slice %29 {offsets = [0, 0], sizes = [1, 128], strides = [1, 1]} : vector<8x128xf32> to vector<1x128xf32>
      %31 = vector.extract_strided_slice %29 {offsets = [1, 0], sizes = [1, 128], strides = [1, 1]} : vector<8x128xf32> to vector<1x128xf32>
      %32 = vector.extract_strided_slice %29 {offsets = [2, 0], sizes = [1, 128], strides = [1, 1]} : vector<8x128xf32> to vector<1x128xf32>
      %c0_14 = arith.constant 0 : index
      %c0_15 = arith.constant 0 : index
      %33 = vector.load %arg2[%c0_14, %c0_15] : memref<528x128xf32, #tpu.memory_space<vmem>>, vector<520x128xf32>
      %34 = vector.broadcast %30 : vector<1x128xf32> to vector<520x128xf32>
      %35 = arith.subf %33, %34 : vector<520x128xf32>
      %36 = arith.mulf %35, %35 : vector<520x128xf32>
      %37 = vector.shape_cast %36 : vector<520x128xf32> to vector<1x520x128xf32>
      %cst_16 = arith.constant dense<0.000000e+00> : vector<1xf32>
      %38 = vector.multi_reduction <add>, %37, %cst_16 [1, 2] : vector<1x520x128xf32> to vector<1xf32>
      %39 = vector.shape_cast %38 : vector<1xf32> to vector<1x1x1xf32>
      %40 = vector.extract %39[0, 0, 0] : f32 from vector<1x1x1xf32>
      %41 = vector.broadcast %40 : f32 to vector<1x128xf32>
      %42 = arith.mulf %31, %41 : vector<1x128xf32>
      %43 = arith.subf %42, %32 : vector<1x128xf32>
      %c0_17 = arith.constant 0 : index
      %c0_18 = arith.constant 0 : index
      %44 = vector.load %arg3[%c0_17, %c0_18] : memref<8x128xf32, #tpu.memory_space<vmem>>, vector<8x128xf32>
      %45 = tpu.iota {dimensions = array<i32: 0>} : vector<8x128xi32>
      %46 = tpu.iota {dimensions = array<i32: 1>} : vector<8x128xi32>
      %c0_i32_19 = arith.constant 0 : i32
      %47 = vector.broadcast %c0_i32_19 : i32 to vector<8x128xi32>
      %48 = arith.cmpi eq, %45, %47 : vector<8x128xi32>
      %c127_i32 = arith.constant 127 : i32
      %49 = vector.broadcast %c127_i32 : i32 to vector<8x128xi32>
      %50 = arith.cmpi eq, %46, %49 : vector<8x128xi32>
      %51 = arith.andi %48, %50 : vector<8x128xi1>
      %52 = vector.shape_cast %43 : vector<1x128xf32> to vector<1x128xf32>
      %53 = vector.broadcast %52 : vector<1x128xf32> to vector<8x128xf32>
      %54 = arith.select %51, %53, %44 : vector<8x128xi1>, vector<8x128xf32>
      %c0_20 = arith.constant 0 : index
      %c0_21 = arith.constant 0 : index
      %55 = vector.load %arg3[%c0_20, %c0_21] : memref<8x128xf32, #tpu.memory_space<vmem>>, vector<8x128xf32>
      tpu.vector_store %arg3[%c0_20, %c0_21], %54 {strides = array<i32>} : memref<8x128xf32, #tpu.memory_space<vmem>>, vector<8x128xf32>,
    } else {
    }
    return
  }
  func.func @transform_0(%arg0: i32) -> (i32, i32) {
    %c0_i32 = arith.constant 0 : i32
    %c0_i32_0 = arith.constant 0 : i32
    return %arg0, %c0_i32 : i32, i32
  }
  func.func @transform_1(%arg0: i32) -> (i32, i32) {
    %c0_i32 = arith.constant 0 : i32
    %c0_i32_0 = arith.constant 0 : i32
    %c0_i32_1 = arith.constant 0 : i32
    return %c0_i32, %c0_i32_0 : i32, i32
  }
  func.func @transform_2(%arg0: i32) -> (i32, i32) {
    %c0_i32 = arith.constant 0 : i32
    %c0_i32_0 = arith.constant 0 : i32
    return %arg0, %c0_i32 : i32, i32
  }
}

</mosaic_0001>

<bundles_post_ra>
// kernel: _forward_impl.1
= control target key start
LH: loop header
LB: loop body
LE: loop exit
PB: predicated region body
PF: predicated region fallthrough
CT: control target
= control target key end

     0   :  { %7 = vsyncpa [#allocation3], 0  ;;  %s1035_s9 = smov [#allocation2]   ;;  %s1438_s0 = inlined_call_operand.vmem [shape: f32[8,128], index: 0, kind: input, shape index: {}]   ;;  %s1439_s1 = inlined_call_operand.hbm [shape: f32[528,128], index: 1, kind: input, shape index: {}]   ;;  %s1440_s2 = inlined_call_operand.vmem [shape: f32[8,128], index: 2, kind: output, shape index: {}]  }
   0x1   :  { %s15_s10 = sshll.u32 %s1035_s9, 4  ;;  %s1011_s13 = scalar_lea.hbm %s1439_s1, 8448  ;;  %s16_s10 = int_to_ptr.vmem [resolvable:$true] %s15_s10 }
   0x2   :  { %p1012_p0 = scmp.ne.s32.totalorder %s1439_s1, %s1011_s13  ;;  %p1015_p1 = scmp.lt.u32.totalorder %s1011_s13, %s1439_s1 }
   0x4   :  { %p1017_p2 = pnand %p1015_p1, %p1012_p0 }
   0x6   :  { %1020 = shalt.err (!%p1017_p2)
}
   0x7   :  { %s1021_s18 = scalar_lea.vmem %s16_s10, 8448  ;;  %p1026_p4 = scmp.lt.s32.totalorder %s16_s10, %s16_s10 }
   0x8   :  { %p1022_p3 = scmp.ne.s32.totalorder %s16_s10, %s1021_s18  ;;  %p1027_p5 = scmp.lt.s32.totalorder %s1021_s18, %s1021_s18 }
   0xa   :  { %p1028_p6 = por %p1027_p5, %p1026_p4 }
   0xc   :  { %p1029_p7 = pnand %p1028_p6, %p1022_p3 }
   0xe   :  { %1032 = shalt.err (!%p1029_p7)
}
   0xf   :  { %s1036_s19 = smov 128   ;;  %s1037_s20 = smov 8  }
  0x10   :  { %21 = dma.hbm_to_vmem [thread:$0]  %s1439_s1, 8448, %s16_s10, [#allocation3], %s1036_s19, %s1036_s19, %s1037_s20  }
  0x11   :  { %1033 = dma.done.wait [#allocation3], 8448  }
  0x12   :  { %1034 = vsyncadd [#allocation3], 4294958848  ;;  %v1448_v0 = vmov 0.0|0.0   ;;  %vm1039_vm0 = vmmov 0   ;;  %v1040_v1 = vmov 0.0   ;;  %v1074_v2 = vld [vmem:[#allocation2] sm:$0xff] }
  0x13   :  { %901 = vmatprep.subr.bf16.mxu0 %v1448_v0  ;;  %793 = vmatprep.mubr.msk.f32.mxu0 %vm1039_vm0, %v1040_v1  ;;  %v1076_v3 = vld [vmem:[#allocation2 + $0x8] sm:$0xff]  ;;  %v1078_v4 = vld [vmem:[#allocation2 + $0x10] sm:$0xff]  ;;  %v1082_v6 = vld [vmem:[#allocation2 + $0x18] sm:$0xff] }
  0x14   :  { %925 = vmatprep.subr.bf16.mxu1 %v1448_v0  ;;  %828 = vmatprep.mubr.msk.f32.mxu1 %vm1039_vm0, %v1040_v1  ;;  %v902_v5 = vpack.c.bf16 %v1076_v3, %v1074_v2  ;;  %v905_v7 = vpack.c.bf16 %v1082_v6, %v1078_v4  ;;  %v1087_v8 = vld [vmem:[#allocation2 + $0x20] sm:$0xff]  ;;  %v1089_v9 = vld [vmem:[#allocation2 + $0x28] sm:$0xff]  ;;  %v1095_v12 = vld [vmem:[#allocation2 + $0x90] sm:$0xff] }
  0x15   :  { %v1091_v10 = vld [vmem:[#allocation2 + $0x80] sm:$0xff]  ;;  %v1093_v11 = vld [vmem:[#allocation2 + $0x88] sm:$0xff]  ;;  %v1097_v13 = vld [vmem:[#allocation2 + $0x98] sm:$0xff]  ;;  %v908_v14 = vpack.c.bf16 %v1089_v9, %v1087_v8 }
  0x16   :  { %903 = vmatpush3.bf16.msra.mxu0 %v902_v5  ;;  %v926_v15 = vpack.c.bf16 %v1093_v11, %v1091_v10  ;;  %v1104_v16 = vld [vmem:[#allocation2 + $0x30] sm:$0xff]  ;;  %v1106_v17 = vld [vmem:[#allocation2 + $0x38] sm:$0xff]  ;;  %v929_v18 = vpack.c.bf16 %v1097_v13, %v1095_v12  ;;  %v1111_v19 = vld [vmem:[#allocation2 + $0xa0] sm:$0xff] }
  0x17   :  { %904 = vmatprep.subr.bf16.mxu0 %v1448_v0  ;;  %v1113_v20 = vld [vmem:[#allocation2 + $0xa8] sm:$0xff]  ;;  %v911_v21 = vpack.c.bf16 %v1106_v17, %v1104_v16  ;;  %v1118_v22 = vld [vmem:[#allocation2 + $0x40] sm:$0xff]  ;;  %v1125_v25 = vld [vmem:[#allocation2 + $0xb0] sm:$0xff] }
  0x18   :  { %927 = vmatpush3.bf16.msra.mxu1 %v926_v15  ;;  %v1120_v23 = vld [vmem:[#allocation2 + $0x48] sm:$0xff]  ;;  %v932_v24 = vpack.c.bf16 %v1113_v20, %v1111_v19  ;;  %v1127_v26 = vld [vmem:[#allocation2 + $0xb8] sm:$0xff]  ;;  %v1132_v28 = vld [vmem:[#allocation2 + $0x50] sm:$0xff] }
  0x19   :  { %928 = vmatprep.subr.bf16.mxu1 %v1448_v0  ;;  %v914_v27 = vpack.c.bf16 %v1120_v23, %v1118_v22  ;;  %v1134_v29 = vld [vmem:[#allocation2 + $0x58] sm:$0xff]  ;;  %v935_v30 = vpack.c.bf16 %v1127_v26, %v1125_v25  ;;  %v1139_v31 = vld [vmem:[#allocation2 + $0xc0] sm:$0xff]  ;;  %v1141_v32 = vld [vmem:[#allocation2 + $0xc8] sm:$0xff] }
  0x1a   :  { %906 = vmatpush3.bf16.msra.mxu0 %v905_v7  ;;  %v917_v33 = vpack.c.bf16 %v1134_v29, %v1132_v28  ;;  %v1146_v34 = vld [vmem:[#allocation2 + $0x60] sm:$0xff]  ;;  %v1148_v35 = vld [vmem:[#allocation2 + $0x68] sm:$0xff]  ;;  %v938_v36 = vpack.c.bf16 %v1141_v32, %v1139_v31  ;;  %v1156_v38 = vld [vmem:[#allocation2 + $0x70] sm:$0xff] }
  0x1b   :  { %907 = vmatprep.subr.bf16.mxu0 %v1448_v0  ;;  %v920_v37 = vpack.c.bf16 %v1148_v35, %v1146_v34  ;;  %v1158_v39 = vld [vmem:[#allocation2 + $0x78] sm:$0xff]  ;;  %v26_v41 = vld [vmem:[%s1438_s0] sm:$0xff]  ;;  %v1170_v42 = vld [vmem:[#allocation2 + $0xd0] sm:$0xff] }
  0x1c   :  { %930 = vmatpush3.bf16.msra.mxu1 %v929_v18  ;;  %v923_v40 = vpack.c.bf16 %v1158_v39, %v1156_v38  ;;  %v1172_v43 = vld [vmem:[#allocation2 + $0xd8] sm:$0xff]  ;;  %v1176_v45 = vld [vmem:[#allocation2 + $0xe0] sm:$0xff]  ;;  %v1178_v46 = vld [vmem:[#allocation2 + $0xe8] sm:$0xff] }
  0x1d   :  { %931 = vmatprep.subr.bf16.mxu1 %v1448_v0  ;;  %v941_v44 = vpack.c.bf16 %v1172_v43, %v1170_v42  ;;  %v944_v47 = vpack.c.bf16 %v1178_v46, %v1176_v45  ;;  %v1183_v48 = vld [vmem:[#allocation2 + $0xf0] sm:$0xff]  ;;  %v1185_v49 = vld [vmem:[#allocation2 + $0xf8] sm:$0xff]  ;;  %v1191_v51 = vld [vmem:[#allocation2 + $0x100] sm:$0xff] }
  0x1e   :  { %909 = vmatpush3.bf16.msra.mxu0 %v908_v14  ;;  %v947_v50 = vpack.c.bf16 %v1185_v49, %v1183_v48  ;;  %v1193_v52 = vld [vmem:[#allocation2 + $0x108] sm:$0xff]  ;;  %v1195_v53 = vld [vmem:[#allocation2 + $0x110] sm:$0xff]  ;;  %v1199_v55 = vld [vmem:[#allocation2 + $0x118] sm:$0xff]  ;;  %v1441_v14 = vlaneseq }
  0x1f   :  { %910 = vmatprep.subr.bf16.mxu0 %v1448_v0  ;;  %v950_v54 = vpack.c.bf16 %v1193_v52, %v1191_v51  ;;  %v953_v56 = vpack.c.bf16 %v1199_v55, %v1195_v53  ;;  %v1204_v57 = vld [vmem:[#allocation2 + $0x120] sm:$0xff]  ;;  %v1206_v58 = vld [vmem:[#allocation2 + $0x128] sm:$0xff]  ;;  %v1211_v60 = vld [vmem:[#allocation2 + $0x130] sm:$0xff] }
  0x20   :  { %933 = vmatpush3.bf16.msra.mxu1 %v932_v24  ;;  %v956_v59 = vpack.c.bf16 %v1206_v58, %v1204_v57  ;;  %v1213_v61 = vld [vmem:[#allocation2 + $0x138] sm:$0xff]  ;;  %v1218_v63 = vld [vmem:[#allocation2 + $0x140] sm:$0xff]  ;;  %v1220_v5 = vld [vmem:[#allocation2 + $0x148] sm:$0xff]  ;;  %v1227_v15 = vshrl.u32 %v1441_v14, 7 }
  0x21   :  { %934 = vmatprep.subr.bf16.mxu1 %v1448_v0  ;;  %v959_v62 = vpack.c.bf16 %v1213_v61, %v1211_v60  ;;  %v962_v7 = vpack.c.bf16 %v1220_v5, %v1218_v63  ;;  %v1282_v14 = vld [vmem:[#allocation2 + $0x1c0] sm:$0xff] }
  0x22   :  { %912 = vmatpush3.bf16.msra.mxu0 %v911_v21  ;;  %v45_v18 = vsub.s32 0, %v1227_v15  ;;  %v1230_v21 = vld [vmem:[#allocation2 + $0x200] sm:$0xff]  ;;  %1462 = vst [vmem:[#allocation12_spill] sm:$0xff] %v1282_v14  ;;  %vm679_vm1 = vcmp.eq.s32.totalorder %v1227_v15, 0 }
  0x23   :  { %913 = vmatprep.subr.bf16.mxu0 %v1448_v0 }
  0x24   :  { %936 = vmatpush3.bf16.msra.mxu1 %v935_v30  ;;  %v46_v24 = vrot.slane %v1230_v21, %v45_v18 }
  0x25   :  { %937 = vmatprep.subr.bf16.mxu1 %v1448_v0 }
  0x26   :  { %915 = vmatpush3.bf16.msra.mxu0 %v914_v27 }
  0x27   :  { %916 = vmatprep.subr.bf16.mxu0 %v1448_v0 }
  0x28   :  { %939 = vmatpush3.bf16.msra.mxu1 %v938_v36 }
  0x29   :  { %940 = vmatprep.subr.bf16.mxu1 %v1448_v0 }
  0x2a   :  { %918 = vmatpush3.bf16.msra.mxu0 %v917_v33 }
  0x2b   :  { %919 = vmatprep.subr.bf16.mxu0 %v1448_v0 }
  0x2c   :  { %942 = vmatpush3.bf16.msra.mxu1 %v941_v44  ;;  %v1241_v44 = vld [vmem:[#allocation2 + $0x160] sm:$0xff] }
  0x2d   :  { %943 = vmatprep.subr.bf16.mxu1 %v1448_v0 }
  0x2e   :  { %921 = vmatpush3.bf16.msra.mxu0 %v920_v37  ;;  %v1235_v37 = vld [vmem:[#allocation2 + $0x150] sm:$0xff] }
  0x2f   :  { %922 = vmatprep.subr.bf16.mxu0 %v1448_v0 }
  0x30   :  { %945 = vmatpush3.bf16.msra.mxu1 %v944_v47  ;;  %v1243_v47 = vld [vmem:[#allocation2 + $0x168] sm:$0xff] }
  0x31   :  { %946 = vmatprep.subr.bf16.mxu1 %v1448_v0 }
  0x32   :  { %924 = vmatpush3.bf16.msra.mxu0 %v923_v40  ;;  %v1237_v40 = vld [vmem:[#allocation2 + $0x158] sm:$0xff] }
  0x33   :  { %949 = vmatprep.subr.bf16.mxu0 %v1448_v0 }
  0x34   :  { %948 = vmatpush3.bf16.msra.mxu1 %v947_v50  ;;  %v968_v50 = vpack.c.bf16 %v1243_v47, %v1241_v44 }
  0x35   :  { %794 = vmatmul.mubr.f32.vlgmr.msra.gmra.mrb[0].mxu0 %v26_v41  ;;  %973 = vmatprep.subr.bf16.mxu1 %v1448_v0  ;;  %v965_v41 = vpack.c.bf16 %v1237_v40, %v1235_v37 }
  0x36   :  { %863 = vmatprep.mubr.msk.f32.mxu0 %vm1039_vm0, %v1040_v1  ;;  %951 = vmatpush3.bf16.msra.mxu0 %v950_v54  ;;  %v1248_v54 = vld [vmem:[#allocation2 + $0x170] sm:$0xff] }
  0x37   :  { %952 = vmatprep.subr.bf16.mxu0 %v1448_v0 }
  0x3a   :  { %954 = vmatpush3.bf16.msra.mxu0 %v953_v56 }
  0x3b   :  { %955 = vmatprep.subr.bf16.mxu0 %v1448_v0 }
  0x3e   :  { %957 = vmatpush3.bf16.msra.mxu0 %v956_v59  ;;  %v1255_v59 = vld [vmem:[#allocation2 + $0x180] sm:$0xff] }
  0x3f   :  { %958 = vmatprep.subr.bf16.mxu0 %v1448_v0 }
  0x42   :  { %960 = vmatpush3.bf16.msra.mxu0 %v959_v62  ;;  %v1257_v62 = vld [vmem:[#allocation2 + $0x188] sm:$0xff] }
  0x43   :  { %961 = vmatprep.subr.bf16.mxu0 %v1448_v0  ;;  %1455 = vst [vmem:[#allocation5_spill] sm:$0xff] %v1257_v62 }
  0x46   :  { %963 = vmatpush3.bf16.msra.mxu0 %v962_v7  ;;  %v974_v7 = vpack.c.bf16 %v1257_v62, %v1255_v59 }
  0x47   :  { %964 = vmatprep.subr.bf16.mxu0 %v1448_v0 }
  0x4a   :  { %966 = vmatpush3.bf16.msra.mxu0 %v965_v41 }
  0x4b   :  { %967 = vmatprep.subr.bf16.mxu0 %v1448_v0 }
  0x4e   :  { %969 = vmatpush3.bf16.msra.mxu0 %v968_v50  ;;  %v1275_v50 = vld [vmem:[#allocation2 + $0x1b0] sm:$0xff] }
  0x4f   :  { %970 = vmatprep.subr.bf16.mxu0 %v1448_v0  ;;  %1460 = vst [vmem:[#allocation10_spill] sm:$0xff] %v1275_v50 }
 0x108   :  { %v113_v27 = vpop.f32.mrb[0].mxu0 }
 0x109   :  { %v114_v30 = vadd.f32 %v113_v27, %v46_v24  ;;  %v795_v33 = vpop.f32.mrb[1].mxu0  ;;  %v1261_v24 = vld [vmem:[#allocation2 + $0x190] sm:$0xff]  ;;  %v1263_v27 = vld [vmem:[#allocation2 + $0x198] sm:$0xff] }
 0x10a   :  { %1456 = vst [vmem:[#allocation6_spill] sm:$0xff] %v1261_v24  ;;  %1457 = vst [vmem:[#allocation7_spill] sm:$0xff] %v1263_v27  ;;  %v1268_v33 = vld [vmem:[#allocation2 + $0x1a0] sm:$0xff] }
 0x10b   :  { %1005 = vtanh.f32 %v114_v30  ;;  %v977_v30 = vpack.c.bf16 %v1263_v27, %v1261_v24  ;;  %1458 = vst [vmem:[#allocation8_spill] sm:$0xff] %v1268_v33  ;;  %v1284_v27 = vld [vmem:[#allocation2 + $0x1c8] sm:$0xff] }
 0x10c   :  { %1463 = vst [vmem:[#allocation13_spill] sm:$0xff] %v1284_v27 }
 0x115   :  { %v1006_v36 = vpop.eup %1005 }
 0x116   :  { %829 = vmatmul.mubr.f32.vlgmr.msra.gmra.mrb[0].mxu1 %v1006_v36  ;;  %v1270_v36 = vld [vmem:[#allocation2 + $0x1a8] sm:$0xff] }
 0x117   :  { %898 = vmatprep.mubr.msk.f32.mxu1 %vm1039_vm0, %v1040_v1  ;;  %v1250_v1 = vld [vmem:[#allocation2 + $0x178] sm:$0xff]  ;;  %975 = vmatpush3.bf16.msra.mxu1 %v974_v7  ;;  %1459 = vst [vmem:[#allocation9_spill] sm:$0xff] %v1270_v36  ;;  %v980_v41 = vpack.c.bf16 %v1270_v36, %v1268_v33  ;;  %v1290_v36 = vld [vmem:[#allocation2 + $0x208] sm:$0xff] }
 0x118   :  { %v971_v56 = vpack.c.bf16 %v1250_v1, %v1248_v54  ;;  %976 = vmatprep.subr.bf16.mxu1 %v1448_v0  ;;  %1464 = vst [vmem:[#allocation14_spill] sm:$0xff] %v1290_v36 }
 0x11a   :  { %972 = vmatpush3.bf16.msra.mxu0 %v971_v56  ;;  %v1277_v56 = vld [vmem:[#allocation2 + $0x1b8] sm:$0xff] }
 0x11b   :  { %978 = vmatpush3.bf16.msra.mxu1 %v977_v30  ;;  %1461 = vst [vmem:[#allocation11_spill] sm:$0xff] %v1277_v56  ;;  %v983_v7 = vpack.c.bf16 %v1277_v56, %v1275_v50  ;;  %v986_v30 = vpack.c.bf16 %v1284_v27, %v1282_v14 }
 0x11c   :  { %979 = vmatprep.subr.bf16.mxu1 %v1448_v0 }
 0x11f   :  { %981 = vmatpush3.bf16.msra.mxu1 %v980_v41  ;;  %v1293_v41 = vrot.slane %v1290_v36, %v45_v18 }
 0x120   :  { %982 = vmatprep.subr.bf16.mxu1 %v1448_v0 }
 0x121   :  { %v465_v56 = vsub.f32 %v1074_v2, %v1293_v41  ;;  %v466_v50 = vsub.f32 %v1076_v3, %v1293_v41  ;;  %v469_v18 = vsub.f32 %v1087_v8, %v1293_v41  ;;  %v470_v2 = vsub.f32 %v1089_v9, %v1293_v41 }
 0x122   :  { %v473_v8 = vsub.f32 %v1118_v22, %v1293_v41  ;;  %v474_v9 = vsub.f32 %v1120_v23, %v1293_v41  ;;  %v477_v23 = vsub.f32 %v1146_v34, %v1293_v41 }
 0x123   :  { %984 = vmatpush3.bf16.msra.mxu1 %v983_v7  ;;  %v467_v7 = vsub.f32 %v1078_v4, %v1293_v41  ;;  %v530_v27 = vmul.f32 %v465_v56, %v465_v56  ;;  %v531_v14 = vmul.f32 %v466_v50, %v466_v50  ;;  %v534_v62 = vmul.f32 %v469_v18, %v469_v18 }
 0x124   :  { %985 = vmatprep.subr.bf16.mxu1 %v1448_v0  ;;  %v471_v4 = vsub.f32 %v1104_v16, %v1293_v41  ;;  %v535_v56 = vmul.f32 %v470_v2, %v470_v2  ;;  %v475_v16 = vsub.f32 %v1132_v28, %v1293_v41  ;;  %v478_v28 = vsub.f32 %v1148_v35, %v1293_v41 }
 0x125   :  { %v595_v33 = vadd.f32 %v531_v14, %v530_v27 }
 0x126   :  { %v540_v18 = vmul.f32 %v475_v16, %v475_v16  ;;  %v482_v16 = vsub.f32 %v1093_v11, %v1293_v41  ;;  %v486_v11 = vsub.f32 %v1113_v20, %v1293_v41  ;;  %v490_v20 = vsub.f32 %v1141_v32, %v1293_v41 }
 0x127   :  { %987 = vmatpush3.bf16.msra.mxu1 %v986_v30  ;;  %v468_v30 = vsub.f32 %v1082_v6, %v1293_v41  ;;  %v472_v6 = vsub.f32 %v1106_v17, %v1293_v41  ;;  %v476_v17 = vsub.f32 %v1134_v29, %v1293_v41  ;;  %v479_v29 = vsub.f32 %v1156_v38, %v1293_v41 }
 0x128   :  { %988 = vmatprep.subr.bf16.mxu1 %v1448_v0  ;;  %v532_v0 = vmul.f32 %v467_v7, %v467_v7  ;;  %v536_v7 = vmul.f32 %v471_v4, %v471_v4  ;;  %v483_v38 = vsub.f32 %v1095_v12, %v1293_v41  ;;  %v487_v12 = vsub.f32 %v1125_v25, %v1293_v41 }
 0x129   :  { %v533_v36 = vmul.f32 %v468_v30, %v468_v30  ;;  %v537_v27 = vmul.f32 %v472_v6, %v472_v6  ;;  %v544_v34 = vmul.f32 %v479_v29, %v479_v29  ;;  %v491_v25 = vsub.f32 %v1170_v42, %v1293_v41 }
 0x12a   :  { %v596_v24 = vadd.f32 %v595_v33, %v532_v0  ;;  %v538_v33 = vmul.f32 %v473_v8, %v473_v8  ;;  %v543_v8 = vmul.f32 %v478_v28, %v478_v28  ;;  %v494_v32 = vsub.f32 %v1178_v46, %v1293_v41 }
 0x12b   :  { %v495_v42 = vsub.f32 %v1183_v48, %v1293_v41  ;;  %v498_v46 = vsub.f32 %v1193_v52, %v1293_v41  ;;  %v499_v48 = vsub.f32 %v1195_v53, %v1293_v41  ;;  %v502_v52 = vsub.f32 %v1206_v58, %v1293_v41 }
 0x12c   :  { %v597_v3 = vadd.f32 %v596_v24, %v533_v36  ;;  %v136_v36 = vsub.s32 1, %v1227_v15  ;;  %v503_v53 = vsub.f32 %v1211_v60, %v1293_v41  ;;  %v506_v58 = vsub.f32 %v1220_v5, %v1293_v41 }
 0x12d   :  { %v507_v60 = vsub.f32 %v1235_v37, %v1293_v41  ;;  %v510_v5 = vsub.f32 %v1243_v47, %v1293_v41  ;;  %v511_v37 = vsub.f32 %v1248_v54, %v1293_v41 }
 0x12e   :  { %v598_v50 = vadd.f32 %v597_v3, %v534_v62  ;;  %v539_v62 = vmul.f32 %v474_v9, %v474_v9  ;;  %v137_v22 = vrot.slane %v1230_v21, %v136_v36  ;;  %v541_v3 = vmul.f32 %v476_v17, %v476_v17 }
 0x12f   :  { %v547_v17 = vmul.f32 %v482_v16, %v482_v16 }
 0x130   :  { %v599_v14 = vadd.f32 %v598_v50, %v535_v56  ;;  %v542_v50 = vmul.f32 %v477_v23, %v477_v23 }
 0x132   :  { %v600_v0 = vadd.f32 %v599_v14, %v536_v7 }
 0x134   :  { %v601_v24 = vadd.f32 %v600_v0, %v537_v27  ;;  %v480_v0 = vsub.f32 %v1158_v39, %v1293_v41  ;;  %v484_v39 = vsub.f32 %v1097_v13, %v1293_v41  ;;  %v488_v13 = vsub.f32 %v1127_v26, %v1293_v41 }
 0x135   :  { %v492_v26 = vsub.f32 %v1172_v43, %v1293_v41  ;;  %v496_v43 = vsub.f32 %v1185_v49, %v1293_v41  ;;  %v500_v49 = vsub.f32 %v1199_v55, %v1293_v41  ;;  %v504_v55 = vsub.f32 %v1213_v61, %v1293_v41 }
 0x136   :  { %v602_v30 = vadd.f32 %v601_v24, %v538_v33  ;;  %v481_v33 = vsub.f32 %v1091_v10, %v1293_v41  ;;  %v545_v24 = vmul.f32 %v480_v0, %v480_v0  ;;  %v485_v10 = vsub.f32 %v1111_v19, %v1293_v41 }
 0x137   :  { %v489_v19 = vsub.f32 %v1139_v31, %v1293_v41  ;;  %v553_v29 = vmul.f32 %v488_v13, %v488_v13  ;;  %v493_v31 = vsub.f32 %v1176_v45, %v1293_v41  ;;  %v497_v45 = vsub.f32 %v1191_v51, %v1293_v41 }
 0x138   :  { %v603_v2 = vadd.f32 %v602_v30, %v539_v62  ;;  %v546_v62 = vmul.f32 %v481_v33, %v481_v33  ;;  %v556_v33 = vmul.f32 %v491_v25, %v491_v25  ;;  %v501_v51 = vsub.f32 %v1204_v57, %v1293_v41 }
 0x139   :  { %v567_v13 = vmul.f32 %v502_v52, %v502_v52  ;;  %v505_v57 = vsub.f32 %v1218_v63, %v1293_v41  ;;  %v508_v61 = vsub.f32 %v1237_v40, %v1293_v41  ;;  %v509_v63 = vsub.f32 %v1241_v44, %v1293_v41  ;;  %v1471_v52 = vld [vmem:[#allocation11_spill] sm:$0xff] }
 0x13a   :  { %v604_v4 = vadd.f32 %v603_v2, %v540_v18  ;;  %v548_v2 = vmul.f32 %v483_v38, %v483_v38  ;;  %v559_v38 = vmul.f32 %v494_v32, %v494_v32  ;;  %v512_v40 = vsub.f32 %v1250_v1, %v1293_v41 }
 0x13b   :  { %v576_v32 = vmul.f32 %v511_v37, %v511_v37  ;;  %v513_v44 = vsub.f32 %v1255_v59, %v1293_v41 }
 0x13c   :  { %v605_v6 = vadd.f32 %v604_v4, %v541_v3  ;;  %v549_v3 = vmul.f32 %v484_v39, %v484_v39 }
 0x13e   :  { %v606_v27 = vadd.f32 %v605_v6, %v542_v50  ;;  %v551_v50 = vmul.f32 %v486_v11, %v486_v11  ;;  %v564_v11 = vmul.f32 %v499_v48, %v499_v48 }
 0x140   :  { %v607_v9 = vadd.f32 %v606_v27, %v543_v8  ;;  %v554_v27 = vmul.f32 %v489_v19, %v489_v19 }
 0x142   :  { %v608_v35 = vadd.f32 %v607_v9, %v544_v34  ;;  %v555_v34 = vmul.f32 %v490_v20, %v490_v20  ;;  %v570_v20 = vmul.f32 %v505_v57, %v505_v57 }
 0x144   :  { %v609_v30 = vadd.f32 %v608_v35, %v545_v24  ;;  %v557_v35 = vmul.f32 %v492_v26, %v492_v26  ;;  %v573_v26 = vmul.f32 %v508_v61, %v508_v61 }
 0x146   :  { %v610_v18 = vadd.f32 %v609_v30, %v546_v62  ;;  %v558_v62 = vmul.f32 %v493_v31, %v493_v31 }
 0x1e9   :  { %v204_v56 = vpop.f32.mrb[0].mxu1 }
 0x1ea   :  { %v205_v7 = vadd.f32 %v204_v56, %v137_v22  ;;  %v830_v14 = vpop.f32.mrb[1].mxu1  ;;  %v611_v22 = vadd.f32 %v610_v18, %v547_v17  ;;  %v550_v56 = vmul.f32 %v485_v10, %v485_v10  ;;  %v560_v18 = vmul.f32 %v495_v42, %v495_v42 }
 0x1ec   :  { %1007 = vtanh.f32 %v205_v7  ;;  %v612_v4 = vadd.f32 %v611_v22, %v548_v2  ;;  %v552_v7 = vmul.f32 %v487_v12, %v487_v12  ;;  %v561_v2 = vmul.f32 %v496_v43, %v496_v43 }
 0x1ee   :  { %v613_v28 = vadd.f32 %v612_v4, %v549_v3  ;;  %v563_v3 = vmul.f32 %v498_v46, %v498_v46 }
 0x1f0   :  { %v614_v6 = vadd.f32 %v613_v28, %v550_v56  ;;  %v565_v28 = vmul.f32 %v500_v49, %v500_v49 }
 0x1f2   :  { %v615_v14 = vadd.f32 %v614_v6, %v551_v50  ;;  %v566_v50 = vmul.f32 %v501_v51, %v501_v51 }
 0x1f4   :  { %v616_v8 = vadd.f32 %v615_v14, %v552_v7  ;;  %v568_v14 = vmul.f32 %v503_v53, %v503_v53 }
 0x1f6   :  { %v1008_v23 = vpop.eup %1007  ;;  %v617_v0 = vadd.f32 %v616_v8, %v553_v29  ;;  %v569_v29 = vmul.f32 %v504_v55, %v504_v55 }
 0x1f7   :  { %864 = vmatmul.mubr.f32.vlgmr.msra.gmra.mrb[2].mxu0 %v1008_v23  ;;  %v562_v23 = vmul.f32 %v497_v45, %v497_v45 }
 0x1f8   :  { %v618_v9 = vadd.f32 %v617_v0, %v554_v27  ;;  %v571_v0 = vmul.f32 %v506_v58, %v506_v58  ;;  %v310_v58 = vld [vmem:[#allocation2 + $0x1d0] sm:$0xff] }
 0x1fa   :  { %v619_v24 = vadd.f32 %v618_v9, %v555_v34  ;;  %v572_v34 = vmul.f32 %v507_v60, %v507_v60 }
 0x1fc   :  { %v620_v16 = vadd.f32 %v619_v24, %v556_v33  ;;  %v574_v24 = vmul.f32 %v509_v63, %v509_v63 }
 0x1fe   :  { %v621_v30 = vadd.f32 %v620_v16, %v557_v35  ;;  %v575_v35 = vmul.f32 %v510_v5, %v510_v5  ;;  %v313_v5 = vld [vmem:[#allocation2 + $0x1e8] sm:$0xff] }
 0x200   :  { %v622_v17 = vadd.f32 %v621_v30, %v558_v62  ;;  %v577_v30 = vmul.f32 %v512_v40, %v512_v40 }
 0x202   :  { %v623_v39 = vadd.f32 %v622_v17, %v559_v38  ;;  %v1465_v38 = vld [vmem:[#allocation5_spill] sm:$0xff]  ;;  %v578_v17 = vmul.f32 %v513_v44, %v513_v44  ;;  %v315_v44 = vld [vmem:[#allocation2 + $0x1f8] sm:$0xff] }
 0x203   :  { %v514_v47 = vsub.f32 %v1465_v38, %v1293_v41 }
 0x204   :  { %v624_v22 = vadd.f32 %v623_v39, %v560_v18  ;;  %v1466_v18 = vld [vmem:[#allocation6_spill] sm:$0xff] }
 0x205   :  { %v515_v54 = vsub.f32 %v1466_v18, %v1293_v41  ;;  %v579_v39 = vmul.f32 %v514_v47, %v514_v47  ;;  %v1474_v47 = vmov 0.0|0.0  }
 0x206   :  { %v625_v10 = vadd.f32 %v624_v22, %v561_v2  ;;  %v1467_v2 = vld [vmem:[#allocation7_spill] sm:$0xff] }
 0x207   :  { %v516_v1 = vsub.f32 %v1467_v2, %v1293_v41  ;;  %v580_v22 = vmul.f32 %v515_v54, %v515_v54 }
 0x208   :  { %v626_v4 = vadd.f32 %v625_v10, %v562_v23  ;;  %v1468_v23 = vld [vmem:[#allocation8_spill] sm:$0xff] }
 0x209   :  { %v517_v59 = vsub.f32 %v1468_v23, %v1293_v41  ;;  %v581_v10 = vmul.f32 %v516_v1, %v516_v1 }
 0x20a   :  { %v627_v56 = vadd.f32 %v626_v4, %v563_v3  ;;  %v1469_v3 = vld [vmem:[#allocation9_spill] sm:$0xff] }
 0x20b   :  { %v518_v4 = vsub.f32 %v1469_v3, %v1293_v41  ;;  %v582_v49 = vmul.f32 %v517_v59, %v517_v59 }
 0x20c   :  { %v628_v12 = vadd.f32 %v627_v56, %v564_v11  ;;  %v1470_v56 = vld [vmem:[#allocation10_spill] sm:$0xff] }
 0x20d   :  { %v519_v51 = vsub.f32 %v1470_v56, %v1293_v41 }
 0x20e   :  { %v629_v6 = vadd.f32 %v628_v12, %v565_v28  ;;  %v583_v28 = vmul.f32 %v518_v4, %v518_v4 }
 0x210   :  { %v630_v7 = vadd.f32 %v629_v6, %v566_v50  ;;  %v520_v50 = vsub.f32 %v1471_v52, %v1293_v41  ;;  %v584_v6 = vmul.f32 %v519_v51, %v519_v51 }
 0x212   :  { %v631_v19 = vadd.f32 %v630_v7, %v567_v13  ;;  %v1472_v13 = vld [vmem:[#allocation12_spill] sm:$0xff]  ;;  %v585_v55 = vmul.f32 %v520_v50, %v520_v50 }
 0x213   :  { %v521_v7 = vsub.f32 %v1472_v13, %v1293_v41 }
 0x214   :  { %v632_v8 = vadd.f32 %v631_v19, %v568_v14  ;;  %v1473_v19 = vld [vmem:[#allocation13_spill] sm:$0xff] }
 0x215   :  { %v522_v57 = vsub.f32 %v1473_v19, %v1293_v41 }
 0x216   :  { %v633_v27 = vadd.f32 %v632_v8, %v569_v29  ;;  %v586_v29 = vmul.f32 %v521_v7, %v521_v7 }
 0x218   :  { %v634_v25 = vadd.f32 %v633_v27, %v570_v20  ;;  %v523_v20 = vsub.f32 %v310_v58, %v1293_v41  ;;  %v587_v27 = vmul.f32 %v522_v57, %v522_v57 }
 0x21a   :  { %v635_v9 = vadd.f32 %v634_v25, %v571_v0  ;;  %v311_v0 = vld [vmem:[#allocation2 + $0x1d8] sm:$0xff]  ;;  %v588_v61 = vmul.f32 %v523_v20, %v523_v20 }
 0x21b   :  { %v524_v25 = vsub.f32 %v311_v0, %v1293_v41 }
 0x21c   :  { %v636_v33 = vadd.f32 %v635_v9, %v572_v34  ;;  %v312_v9 = vld [vmem:[#allocation2 + $0x1e0] sm:$0xff] }
 0x21d   :  { %v525_v63 = vsub.f32 %v312_v9, %v1293_v41 }
 0x21e   :  { %v637_v31 = vadd.f32 %v636_v33, %v573_v26  ;;  %v589_v26 = vmul.f32 %v524_v25, %v524_v25 }
 0x220   :  { %v638_v16 = vadd.f32 %v637_v31, %v574_v24  ;;  %v526_v24 = vsub.f32 %v313_v5, %v1293_v41  ;;  %v590_v31 = vmul.f32 %v525_v63, %v525_v63 }
 0x222   :  { %v639_v62 = vadd.f32 %v638_v16, %v575_v35  ;;  %v314_v35 = vld [vmem:[#allocation2 + $0x1f0] sm:$0xff]  ;;  %v989_v16 = vpack.c.bf16 %v311_v0, %v310_v58 }
 0x223   :  { %v527_v40 = vsub.f32 %v314_v35, %v1293_v41 }
 0x224   :  { %v640_v42 = vadd.f32 %v639_v62, %v576_v32  ;;  %v591_v32 = vmul.f32 %v526_v24, %v526_v24  ;;  %990 = vmatpush3.bf16.msra.mxu1 %v989_v16 }
 0x225   :  { %v592_v38 = vmul.f32 %v527_v40, %v527_v40  ;;  %991 = vmatprep.subr.bf16.mxu1 %v1474_v47 }
 0x226   :  { %v641_v43 = vadd.f32 %v640_v42, %v577_v30  ;;  %v992_v30 = vpack.c.bf16 %v313_v5, %v312_v9  ;;  %v528_v42 = vsub.f32 %v315_v44, %v1293_v41 }
 0x228   :  { %v642_v45 = vadd.f32 %v641_v43, %v578_v17  ;;  %v529_v43 = vsub.f32 %v1230_v21, %v1293_v41  ;;  %v593_v18 = vmul.f32 %v528_v42, %v528_v42  ;;  %993 = vmatpush3.bf16.msra.mxu1 %v992_v30 }
 0x229   :  { %994 = vmatprep.subr.bf16.mxu1 %v1474_v47 }
 0x22a   :  { %v643_v46 = vadd.f32 %v642_v45, %v579_v39  ;;  %v995_v39 = vpack.c.bf16 %v315_v44, %v314_v35  ;;  %v594_v45 = vmul.f32 %v529_v43, %v529_v43 }
 0x22c   :  { %v644_v48 = vadd.f32 %v643_v46, %v580_v22  ;;  %996 = vmatpush3.bf16.msra.mxu1 %v995_v39  ;;  %v227_v22 = vsub.s32 2, %v1227_v15 }
 0x22e   :  { %v645_v11 = vadd.f32 %v644_v48, %v581_v10  ;;  %v228_v46 = vrot.slane %v1230_v21, %v227_v22 }
 0x230   :  { %v646_v12 = vadd.f32 %v645_v11, %v582_v49 }
 0x232   :  { %v647_v53 = vadd.f32 %v646_v12, %v583_v28  ;;  %v1475_v12 = vld [vmem:[#allocation14_spill] sm:$0xff] }
 0x233   :  { %v671_v50 = vrot.slane %v1475_v12, 1 }
 0x234   :  { %v648_v14 = vadd.f32 %v647_v53, %v584_v6  ;;  %v318_v6 = vsub.s32 3, %v1227_v15  ;;  %v1476_v53 = vlaneseq }
 0x236   :  { %v649_v8 = vadd.f32 %v648_v14, %v585_v55  ;;  %v678_v13 = vand.u32 127, %v1476_v53  ;;  %v319_v55 = vrot.slane %v1230_v21, %v318_v6 }
 0x238   :  { %v650_v60 = vadd.f32 %v649_v8, %v586_v29  ;;  %vm680_vm2 = vcmp.eq.s32.totalorder %v678_v13, 127 }
 0x239   :  { %vm681_vm3 = vmand %vm679_vm1, %vm680_vm2 }
 0x23a   :  { %v651_v34 = vadd.f32 %v650_v60, %v587_v27 }
 0x23c   :  { %v652_v33 = vadd.f32 %v651_v34, %v588_v61 }
 0x23e   :  { %v653_v37 = vadd.f32 %v652_v33, %v589_v26 }
 0x240   :  { %v654_v62 = vadd.f32 %v653_v37, %v590_v31 }
 0x242   :  { %v655_v17 = vadd.f32 %v654_v62, %v591_v32 }
 0x244   :  { %v656_v54 = vadd.f32 %v655_v17, %v592_v38 }
 0x246   :  { %v657_v2 = vadd.f32 %v656_v54, %v593_v18 }
 0x248   :  { %v658_v1 = vadd.f32 %v657_v2, %v594_v45 }
 0x24a   :  { %659 = vadd.xlane.f32.xlu0 %v658_v1 }
 0x2ca   :  { %v295_v23 = vpop.f32.mrb[2].mxu0 }
 0x2cb   :  { %v296_v59 = vadd.f32 %v295_v23, %v228_v46  ;;  %v865_v10 = vpop.f32.mrb[3].mxu0 }
 0x2cd   :  { %1009 = vtanh.f32 %v296_v59 }
 0x2d7   :  { %v1010_v41 = vpop.eup %1009  ;;  %v660_v48 = vpop.xlane.xlu0 %659 }
 0x2d8   :  { %899 = vmatmul.mubr.f32.vlgmr.msra.gmra.mrb[2].mxu1 %v1010_v41  ;;  %v661_v3 = vrot.slane %v660_v48, 4 }
 0x2da   :  { %v662_v4 = vadd.f32 %v661_v3, %v660_v48 }
 0x2dc   :  { %v663_v49 = vrot.slane %v662_v4, 2 }
 0x2de   :  { %v664_v11 = vadd.f32 %v663_v49, %v662_v4 }
 0x2e0   :  { %v665_v56 = vrot.slane %v664_v11, 1 }
 0x2e2   :  { %v666_v51 = vadd.f32 %v665_v56, %v664_v11 }
 0x2e4   :  { %997 = vpush %v666_v51 }
 0x315   :  { %s998_s0 = spop %997 }
 0x316   :  { %v668_v28 = vstv %s998_s0 }
 0x317   :  { %v669_v52 = vmul.f32 %v668_v28, %v1475_v12 }
 0x319   :  { %v673_v7 = vsub.f32 %v669_v52, %v671_v50 }
 0x31b   :  { %v685_v19 = vrot.slane %v673_v7, %v136_v36 }
 0x3ab   :  { %v386_v14 = vpop.f32.mrb[2].mxu1 }
 0x3ac   :  { %v387_v57 = vadd.f32 %v386_v14, %v319_v55  ;;  %v900_v29 = vpop.f32.mrb[3].mxu1 }
 0x3ae   :  { %v686_v8 = vsel %vm681_vm3, %v685_v19, %v387_v57 }
 0x3af   :  { %687 = vst [vmem:[%s1440_s2] sm:$0xff] %v686_v8 }
 0x3b0   :  { %692 = vsyncpa [#allocation3], 1 }

</bundles_post_ra>
